<compile_context>
chip_gen: v7x
topology: tpu7x:2x2x1
jax: 0.10.0
libtpu: 0.0.40
codegen_flags: <defaults>
</compile_context>

<pallas_src>
import math
import numpy as np
import jax
import jax.numpy as jnp
from jax.experimental import pallas as pl
from jax.experimental.pallas import tpu as pltpu

# ---- model dims (small, consistent with the module) ----
B = 2            # batch
S = 8            # seq_len
H = 32           # hidden_size
VOCAB = 64       # vocab_size
NSEG = 8         # segment rows reserved in fused table (3 real rows, rest zero)
BS = B * S

SEG_OFF = VOCAB              # 64
POS_OFF = VOCAB + NSEG       # 72
K = 128                      # fused table rows: 64 + 8 + 8 = 80, zero-padded to one full lane tile


def joint_embedding_kernel(tok_ref, seg_ref, pos_ref, table_ref, out_ref):
    # tok/seg/pos: (BS, 1) int32 column indices into the fused table; table: (K, H) f32.
    iota = jax.lax.broadcasted_iota(jnp.int32, (BS, K), 1)
    # 3-hot selector: exactly one 1 in each of the disjoint column ranges
    # [0,64) tokens, [64,72) segments, [72,80) positions; columns >= 80 never match.
    hot = (iota == tok_ref[...]) | (iota == seg_ref[...]) | (iota == pos_ref[...])
    sel = hot.astype(jnp.float32)                                   # (BS, K)
    # x = token_emb + position + segment_emb, fused into one MXU matmul.
    # dropout(x): identity (eval-mode semantics).
    out_ref[...] = jnp.dot(sel, table_ref[...],
                           preferred_element_type=jnp.float32).astype(out_ref.dtype)


def joint_embedding(sequence, segment_label, tok_table, seg_table, pos_emb):
    """sequence, segment_label: (B, S) int32. Returns (B, S, H) float32."""
    tok_idx = sequence.reshape(BS, 1).astype(jnp.int32)
    seg_idx = segment_label.reshape(BS, 1).astype(jnp.int32) + SEG_OFF
    pos_idx = (jnp.arange(BS, dtype=jnp.int32) % S).reshape(BS, 1) + POS_OFF

    # Fused, zero-padded lookup table: [tokens | segments | positions | zero pad] -> (K, H).
    table = jnp.zeros((K, H), jnp.float32)
    table = table.at[:VOCAB].set(tok_table)
    table = table.at[SEG_OFF:SEG_OFF + seg_table.shape[0]].set(seg_table)
    table = table.at[POS_OFF:POS_OFF + S].set(pos_emb)

    full = lambda a: pl.BlockSpec(a.shape, lambda i: (0,) * a.ndim)
    args = (tok_idx, seg_idx, pos_idx, table)

    out = pl.pallas_call(
        joint_embedding_kernel,
        out_shape=jax.ShapeDtypeStruct((BS, H), jnp.float32),
        grid_spec=pltpu.PrefetchScalarGridSpec(
            num_scalar_prefetch=0,
            grid=(1,),                                   # single step: whole problem in one block
            in_specs=[full(a) for a in args],
            out_specs=pl.BlockSpec((BS, H), lambda i: (0, 0)),
        ),
        compiler_params=pltpu.CompilerParams(
            dimension_semantics=("arbitrary",)),
    )(*args)
    return out.reshape(B, S, H)


def calculate_positional_embeddings(d_model, seq_length):
    """Exact replica of the module's (slightly unusual) positional-embedding formula."""
    scalar = 10000.0
    pe = np.zeros((seq_length, d_model), dtype=np.float32)
    for pos in range(seq_length):
        for i in range(0, d_model, 2):
            pe[pos, i] = math.sin(pos / scalar ** (2 * i / d_model))
            pe[pos, i + 1] = math.cos(pos / scalar ** (2 * (i + 1) / d_model))
    return jnp.asarray(pe)                               # (S, H)


def make_params(key):
    """Embedding tables matching freshly-initialized nn.Embedding layers (padding_idx=0 rows zeroed)."""
    k_tok, k_seg = jax.random.split(key)
    tok_table = (0.02 * jax.random.normal(k_tok, (VOCAB, H))).astype(jnp.float32)
    tok_table = tok_table.at[0].set(0.0)                 # padding_idx=0
    seg_table = (0.02 * jax.random.normal(k_seg, (3, H))).astype(jnp.float32)
    seg_table = seg_table.at[0].set(0.0)                 # padding_idx=0
    return tok_table, seg_table


if __name__ == "__main__":
    key = jax.random.PRNGKey(0)
    k_seq, k_seg, k_par = jax.random.split(key, 3)

    sequence = jax.random.randint(k_seq, (B, S), 0, VOCAB, dtype=jnp.int32)
    segment_label = jax.random.randint(k_seg, (B, S), 0, 3, dtype=jnp.int32)
    tok_table, seg_table = make_params(k_par)
    pos_emb = calculate_positional_embeddings(H, S)      # (S, H)

    out = joint_embedding(sequence, segment_label, tok_table, seg_table, pos_emb)
    jax.block_until_ready(out)
    assert out.shape == (B, S, H)

    # pure-JAX reference (dropout is identity in eval mode)
    ref = tok_table[sequence] + pos_emb[None, :, :] + seg_table[segment_label]
    assert jnp.allclose(out, ref, atol=1e-5, rtol=1e-5)
    print("KERNEL_OK")
</pallas_src>

<mosaic_0001>
module attributes {stable_mosaic.version = 11 : i64} {
  func.func @joint_embedding_kernel(%arg0: i32, %arg1: memref<16x1xi32, #tpu.memory_space<vmem>>, %arg2: memref<16x1xi32, #tpu.memory_space<vmem>>, %arg3: memref<16x1xi32, #tpu.memory_space<vmem>>, %arg4: memref<128x32xf32, #tpu.memory_space<vmem>>, %arg5: memref<16x32xf32, #tpu.memory_space<vmem>>) attributes {dimension_semantics = [#tpu.dimension_semantics<arbitrary>], iteration_bounds = array<i64: 1>, scalar_prefetch = 0 : i64, scratch_operands = 0 : i64, tpu.core_type = #tpu.core_type<tc>, window_params = [{pipeline_mode = #tpu.pipeline_mode<synchronous>, transform_indices = @transform_0, window_bounds = array<i64: 16, 1>}, {pipeline_mode = #tpu.pipeline_mode<synchronous>, transform_indices = @transform_1, window_bounds = array<i64: 16, 1>}, {pipeline_mode = #tpu.pipeline_mode<synchronous>, transform_indices = @transform_2, window_bounds = array<i64: 16, 1>}, {pipeline_mode = #tpu.pipeline_mode<synchronous>, transform_indices = @transform_3, window_bounds = array<i64: 128, 32>}, {pipeline_mode = #tpu.pipeline_mode<synchronous>, transform_indices = @transform_4, window_bounds = array<i64: 16, 32>}]} {
    %0 = tpu.iota {dimensions = array<i32: 1>} : vector<16x128xi32>
    %c0 = arith.constant 0 : index
    %c0_0 = arith.constant 0 : index
    %1 = vector.load %arg1[%c0, %c0_0] : memref<16x1xi32, #tpu.memory_space<vmem>>, vector<16x1xi32>
    %2 = vector.broadcast %1 : vector<16x1xi32> to vector<16x128xi32>
    %3 = arith.cmpi eq, %0, %2 : vector<16x128xi32>
    %c0_1 = arith.constant 0 : index
    %c0_2 = arith.constant 0 : index
    %4 = vector.load %arg2[%c0_1, %c0_2] : memref<16x1xi32, #tpu.memory_space<vmem>>, vector<16x1xi32>
    %5 = vector.broadcast %4 : vector<16x1xi32> to vector<16x128xi32>
    %6 = arith.cmpi eq, %0, %5 : vector<16x128xi32>
    %7 = arith.ori %3, %6 : vector<16x128xi1>
    %c0_3 = arith.constant 0 : index
    %c0_4 = arith.constant 0 : index
    %8 = vector.load %arg3[%c0_3, %c0_4] : memref<16x1xi32, #tpu.memory_space<vmem>>, vector<16x1xi32>
    %9 = vector.broadcast %8 : vector<16x1xi32> to vector<16x128xi32>
    %10 = arith.cmpi eq, %0, %9 : vector<16x128xi32>
    %11 = arith.ori %7, %10 : vector<16x128xi1>
    %12 = arith.extui %11 : vector<16x128xi1> to vector<16x128xi32>
    %13 = arith.sitofp %12 : vector<16x128xi32> to vector<16x128xf32>
    %c0_5 = arith.constant 0 : index
    %c0_6 = arith.constant 0 : index
    %14 = vector.load %arg4[%c0_5, %c0_6] : memref<128x32xf32, #tpu.memory_space<vmem>>, vector<128x32xf32>
    %cst = arith.constant dense<0.000000e+00> : vector<16x32xf32>
    %15 = tpu.matmul %13, %14, %cst {dimension_numbers = #tpu.dot_dimension_numbers<[1], [0], [0], [1], [0, 0, 1, 1], [], []>} : vector<16x128xf32>, vector<128x32xf32>, vector<16x32xf32> -> vector<16x32xf32>
    %c0_7 = arith.constant 0 : index
    %c0_8 = arith.constant 0 : index
    %16 = vector.load %arg5[%c0_7, %c0_8] : memref<16x32xf32, #tpu.memory_space<vmem>>, vector<16x32xf32>
    tpu.vector_store %arg5[%c0_7, %c0_8], %15 {strides = array<i32>} : memref<16x32xf32, #tpu.memory_space<vmem>>, vector<16x32xf32>,
    return
  }
  func.func @transform_0(%arg0: i32) -> (i32, i32) {
    %c0_i32 = arith.constant 0 : i32
    %c0_i32_0 = arith.constant 0 : i32
    %c0_i32_1 = arith.constant 0 : i32
    return %c0_i32, %c0_i32_0 : i32, i32
  }
  func.func @transform_1(%arg0: i32) -> (i32, i32) {
    %c0_i32 = arith.constant 0 : i32
    %c0_i32_0 = arith.constant 0 : i32
    %c0_i32_1 = arith.constant 0 : i32
    return %c0_i32, %c0_i32_0 : i32, i32
  }
  func.func @transform_2(%arg0: i32) -> (i32, i32) {
    %c0_i32 = arith.constant 0 : i32
    %c0_i32_0 = arith.constant 0 : i32
    %c0_i32_1 = arith.constant 0 : i32
    return %c0_i32, %c0_i32_0 : i32, i32
  }
  func.func @transform_3(%arg0: i32) -> (i32, i32) {
    %c0_i32 = arith.constant 0 : i32
    %c0_i32_0 = arith.constant 0 : i32
    %c0_i32_1 = arith.constant 0 : i32
    return %c0_i32, %c0_i32_0 : i32, i32
  }
  func.func @transform_4(%arg0: i32) -> (i32, i32) {
    %c0_i32 = arith.constant 0 : i32
    %c0_i32_0 = arith.constant 0 : i32
    %c0_i32_1 = arith.constant 0 : i32
    return %c0_i32, %c0_i32_0 : i32, i32
  }
}

</mosaic_0001>

<bundles_post_ra>
// kernel: tpu_custom_call.1
= control target key start
LH: loop header
LB: loop body
LE: loop exit
PB: predicated region body
PF: predicated region fallthrough
CT: control target
= control target key end

     0   :  { %v288_v2 = vmov 0   ;;  %s396_s0 = inlined_call_operand.vmem [shape: s32[16,1], index: 0, kind: input, shape index: {}]   ;;  %s397_s1 = inlined_call_operand.vmem [shape: s32[16,1], index: 1, kind: input, shape index: {}]   ;;  %s398_s2 = inlined_call_operand.vmem [shape: s32[16,1], index: 2, kind: input, shape index: {}]   ;;  %s399_s3 = inlined_call_operand.vmem [shape: f32[128,32], index: 3, kind: input, shape index: {}]   ;;  %s400_s4 = inlined_call_operand.hbm [shape: f32[16,32], index: 4, kind: output, shape index: {}]  }
   0x1   :  { %v21_v0 = vld [vmem:[%s396_s0 + $0x8] sm:$0xff]  ;;  %v20_v1 = vld [vmem:[%s396_s0] sm:$0xff]  ;;  %263 = vset.pattern.permute.xlu1 %v288_v2  ;;  %262 = vset.pattern.permute.xlu0 %v288_v2  ;;  %v60_v5 = vld [vmem:[%s399_s3 + $0x10] sm:$0xff] }
   0x2   :  { %26 = vperm.xlu1 %263, %v21_v0   ;;  %23 = vperm.xlu0 %262, %v20_v1   ;;  %v58_v3 = vld [vmem:[%s399_s3] sm:$0xff]  ;;  %v59_v4 = vld [vmem:[%s399_s3 + $0x8] sm:$0xff]  ;;  %v61_v9 = vld [vmem:[%s399_s3 + $0x18] sm:$0xff] }
   0x3   :  { %v31_v6 = vld [vmem:[%s397_s1 + $0x8] sm:$0xff]  ;;  %v30_v7 = vld [vmem:[%s397_s1] sm:$0xff]  ;;  %v225_v8 = vpack.c.bf16 %v59_v4, %v58_v3  ;;  %v229_v10 = vpack.c.bf16 %v61_v9, %v60_v5 }
   0x4   :  { %v62_v11 = vld [vmem:[%s399_s3 + $0x20] sm:$0xff]  ;;  %v63_v12 = vld [vmem:[%s399_s3 + $0x28] sm:$0xff] }
   0x5   :  { %226 = vmatprep.subr.bf16.mxu0 %v225_v8  ;;  %v43_v13 = vld [vmem:[%s398_s2 + $0x8] sm:$0xff]  ;;  %v42_v14 = vld [vmem:[%s398_s2] sm:$0xff] }
   0x6   :  { %36 = vperm.xlu1 %263, %v31_v6   ;;  %33 = vperm.xlu0 %262, %v30_v7  }
   0x7   :  { %228 = vmatpush3.bf16.msra.mxu0 %v225_v8 }
   0x8   :  { %9 = vsyncpa [#allocation3], 0  ;;  %230 = vmatprep.subr.bf16.mxu0 %v229_v10  ;;  %v233_v15 = vpack.c.bf16 %v63_v12, %v62_v11  ;;  %v64_v16 = vld [vmem:[%s399_s3 + $0x30] sm:$0xff]  ;;  %v65_v17 = vld [vmem:[%s399_s3 + $0x38] sm:$0xff]  ;;  %v18_v31 = vlaneseq  ;;  %v289_v39 = vmov 1.0   ;;  %vm149_vm10 = vcmask 261120  }
   0x9   :  { %v237_v18 = vpack.c.bf16 %v65_v17, %v64_v16  ;;  %v66_v19 = vld [vmem:[%s399_s3 + $0x40] sm:$0xff]  ;;  %v67_v20 = vld [vmem:[%s399_s3 + $0x48] sm:$0xff]  ;;  %v68_v22 = vld [vmem:[%s399_s3 + $0x50] sm:$0xff] }
   0xa   :  { %48 = vperm.xlu1 %263, %v43_v13   ;;  %45 = vperm.xlu0 %262, %v42_v14   ;;  %v241_v21 = vpack.c.bf16 %v67_v20, %v66_v19  ;;  %v69_v23 = vld [vmem:[%s399_s3 + $0x58] sm:$0xff]  ;;  %v70_v25 = vld [vmem:[%s399_s3 + $0x60] sm:$0xff]  ;;  %v71_v26 = vld [vmem:[%s399_s3 + $0x68] sm:$0xff]  ;;  %v19_v34 = vand.u32 127, %v18_v31 }
   0xb   :  { %232 = vmatpush3.bf16.msra.mxu0 %v229_v10  ;;  %v245_v24 = vpack.c.bf16 %v69_v23, %v68_v22  ;;  %v249_v27 = vpack.c.bf16 %v71_v26, %v70_v25  ;;  %v72_v28 = vld [vmem:[%s399_s3 + $0x70] sm:$0xff]  ;;  %v73_v29 = vld [vmem:[%s399_s3 + $0x78] sm:$0xff]  ;;  %s290_s3 = smov [#allocation2]  }
   0xc   :  { %234 = vmatprep.subr.bf16.mxu0 %v233_v15  ;;  %v253_v30 = vpack.c.bf16 %v73_v29, %v72_v28  ;;  %s157_s29 = sshll.u32 %s290_s3, 4  ;;  %s158_s29 = int_to_ptr.vmem [resolvable:$true] %s157_s29 }
   0xd   :  { %s264_s30 = scalar_lea.vmem %s158_s29, 256  ;;  %p269_p1 = scmp.lt.s32.totalorder %s158_s29, %s158_s29 }
   0xe   :  { %p265_p0 = scmp.ne.s32.totalorder %s158_s29, %s264_s30  ;;  %p270_p2 = scmp.lt.s32.totalorder %s264_s30, %s264_s30 }
   0xf   :  { %236 = vmatpush3.bf16.msra.mxu0 %v233_v15 }
  0x10   :  { %238 = vmatprep.subr.bf16.mxu0 %v237_v18  ;;  %p271_p3 = por %p270_p2, %p269_p1 }
  0x12   :  { %p272_p4 = pnand %p271_p3, %p265_p0 }
  0x13   :  { %240 = vmatpush3.bf16.msra.mxu0 %v237_v18 }
  0x14   :  { %242 = vmatprep.subr.bf16.mxu0 %v241_v21 }
  0x17   :  { %244 = vmatpush3.bf16.msra.mxu0 %v241_v21 }
  0x18   :  { %246 = vmatprep.subr.bf16.mxu0 %v245_v24 }
  0x1b   :  { %248 = vmatpush3.bf16.msra.mxu0 %v245_v24 }
  0x1c   :  { %250 = vmatprep.subr.bf16.mxu0 %v249_v27 }
  0x1f   :  { %252 = vmatpush3.bf16.msra.mxu0 %v249_v27 }
  0x20   :  { %254 = vmatprep.subr.bf16.mxu0 %v253_v30 }
  0x23   :  { %256 = vmatpush3.bf16.msra.mxu0 %v253_v30 }
  0x81   :  { %v27_v32 = vpop.permute.xlu1 %26  ;;  %v24_v33 = vpop.permute.xlu0 %23 }
  0x82   :  { %vm29_vm2 = vcmp.eq.s32.totalorder %v19_v34, %v27_v32  ;;  %vm28_vm3 = vcmp.eq.s32.totalorder %v19_v34, %v24_v33 }
  0x85   :  { %v37_v35 = vpop.permute.xlu1 %36  ;;  %v34_v36 = vpop.permute.xlu0 %33 }
  0x86   :  { %vm39_vm0 = vcmp.eq.s32.totalorder %v19_v34, %v37_v35  ;;  %vm38_vm1 = vcmp.eq.s32.totalorder %v19_v34, %v34_v36 }
  0x87   :  { %vm41_vm4 = vmor %vm29_vm2, %vm39_vm0 }
  0x88   :  { %vm40_vm7 = vmor %vm28_vm3, %vm38_vm1 }
  0x89   :  { %v49_v37 = vpop.permute.xlu1 %48  ;;  %v46_v38 = vpop.permute.xlu0 %45 }
  0x8a   :  { %vm51_vm5 = vcmp.eq.s32.totalorder %v19_v34, %v49_v37  ;;  %vm50_vm6 = vcmp.eq.s32.totalorder %v19_v34, %v46_v38 }
  0x8b   :  { %vm53_vm8 = vmor %vm41_vm4, %vm51_vm5 }
  0x8c   :  { %vm52_vm9 = vmor %vm40_vm7, %vm50_vm6 }
  0x8d   :  { %222 = vmatprep.mubr.msk.f32.mxu0 %vm52_vm9, %v289_v39 }
  0x8e   :  { %223 = vmatmul.mubr.msk.f32.vlgmr.msra.gmra.mrb[0].mxu0 %vm53_vm8, %v289_v39 }
 0x161   :  { %v224_v40 = vpop.f32.mrb[0].mxu0 }
 0x162   :  { %151 = vst.msk [vmem:[#allocation2 + $0x8] sm:$0xff] %vm149_vm10, %v224_v40  ;;  %v140_v41 = vpop.f32.mrb[1].mxu0 }
 0x163   :  { %150 = vst.msk [vmem:[#allocation2] sm:$0xff] %vm149_vm10, %v140_v41 }
 0x164   :  { %275 = shalt.err (!%p272_p4)
}
 0x165   :  { %s276_s7 = scalar_lea.hbm %s400_s4, 256 }
 0x166   :  { %p277_p5 = scmp.ne.s32.totalorder %s400_s4, %s276_s7  ;;  %p280_p6 = scmp.lt.u32.totalorder %s276_s7, %s400_s4 }
 0x168   :  { %p282_p7 = pnand %p280_p6, %p277_p5 }
 0x16a   :  { %285 = shalt.err (!%p282_p7)
}
 0x16b   :  { %s291_s11 = smov 128   ;;  %s292_s12 = smov 8  }
 0x16c   :  { %163 = dma.vmem_to_hbm [thread:$0]  %s158_s29, 256, %s400_s4, [#allocation3], %s291_s11, %s291_s11, %s292_s12  }
 0x16d   :  { %286 = dma.done.wait [#allocation3], 256  }
 0x16e   :  { %287 = vsyncadd [#allocation3], 4294967040 }
 0x16f   :  { %167 = vsyncpa [#allocation3], 1 }

</bundles_post_ra>
